<compile_context>
chip_gen: v6e
topology: v6e:2x2x1
jax: 0.10.0
libtpu: 0.0.40
codegen_flags: <defaults>
</compile_context>

<pallas_src>
import functools
import math

import jax
import jax.numpy as jnp
from jax import lax
from jax.experimental import pallas as pl
from jax.experimental.pallas import tpu as pltpu

SMOOTH = 1e-6


def _f1_partials_kernel(d_ref, t_ref, tp_ref, sp_ref, st_ref, *,
                        row_tile, lane_w, n_valid, approx):
    """Accumulate per-lane partial sums of (p1*t, p1, t) over the batch-row grid."""
    step = pl.program_id(0)

    @pl.when(step == 0)
    def _init():
        tp_ref[...] = jnp.zeros_like(tp_ref)
        sp_ref[...] = jnp.zeros_like(sp_ref)
        st_ref[...] = jnp.zeros_like(st_ref)

    d = d_ref[...]                              # (row_tile, lane_w) f32 logit diff (x1 - x0)
    t = t_ref[...]                              # (row_tile, lane_w) f32 labels
    # 2-class softmax == sigmoid of the logit difference; exp goes to the EUP slot.
    p1 = pl.reciprocal(1.0 + jnp.exp(-d), approx=approx)

    def _accumulate(p1v, tv):
        # Per-tile sublane reduction -> (1, lane_w); RMW of a few vregs replaces the
        # former three full-tile accumulator read-modify-writes.
        tp_ref[...] += jnp.sum(p1v * tv, axis=0, keepdims=True)
        sp_ref[...] += jnp.sum(p1v, axis=0, keepdims=True)
        st_ref[...] += jnp.sum(tv, axis=0, keepdims=True)

    row0 = step * row_tile
    tile_end_flat = (row0 + row_tile) * lane_w

    @pl.when(tile_end_flat <= n_valid)          # interior tile: no masking cost
    def _full():
        _accumulate(p1, t)

    @pl.when(tile_end_flat > n_valid)           # tail tile: exact element-level mask
    def _tail():
        r = lax.broadcasted_iota(jnp.int32, (row_tile, lane_w), 0)
        c = lax.broadcasted_iota(jnp.int32, (row_tile, lane_w), 1)
        valid = (row0 + r) * lane_w + c < n_valid
        zero = jnp.zeros_like(p1)
        _accumulate(jnp.where(valid, p1, zero), jnp.where(valid, t, zero))


def f1_loss(y_pred, y_true, *, target_tile_elems=1 << 20, approx_sigmoid=False):
    """y_pred: (B, T, 2) logits; y_true: (B, T) {0,1}. Returns scalar f32 loss."""
    B, T, C = y_pred.shape
    assert C == 2, "F1Loss Pallas kernel supports binary classification (C == 2)"
    # TODO(synk): C > 2 would need full per-class softmax planes instead of sigmoid(diff).

    yp = y_pred.astype(jnp.float32)
    # One fused elementwise pass, batch-major, no transpose.
    d = yp[:, :, 1] - yp[:, :, 0]               # (B, T) f32
    t = y_true.astype(jnp.float32)              # no-op when labels are already f32

    # Lane-dense layout via a free reshape: fold `fold` batch rows into the lane axis so
    # the kernel's last dim (fold*T) is a multiple of 128.  Lane = l*T + task.
    fold = 128 // math.gcd(128, T)
    lane_w = fold * T
    b_pad = ((B + fold - 1) // fold) * fold
    if b_pad != B:
        # <= fold-1 (< 128) rows of alignment pad; values are don't-care because the
        # kernel masks by exact flat index.  When B % fold == 0 (the common training
        # case) both arrays are passed completely untouched.
        d = jnp.pad(d, ((0, b_pad - B), (0, 0)))
        t = jnp.pad(t, ((0, b_pad - B), (0, 0)))
    rows = b_pad // fold
    d = d.reshape(rows, lane_w)
    t = t.reshape(rows, lane_w)

    # Row tile: biggest that keeps 2 inputs x 2 pipeline buffers comfortably in VMEM.
    target_rows = max(8, (target_tile_elems // lane_w) // 8 * 8)
    if rows <= target_rows:
        row_tile = rows                         # single step, block == full array
    else:
        row_tile = target_rows                  # multiple of 8; ragged tail masked
    n_steps = (rows + row_tile - 1) // row_tile
    n_valid = B * T

    kernel = functools.partial(
        _f1_partials_kernel, row_tile=row_tile, lane_w=lane_w,
        n_valid=n_valid, approx=approx_sigmoid)

    acc_shape = jax.ShapeDtypeStruct((1, lane_w), jnp.float32)
    acc_spec = pl.BlockSpec((1, lane_w), lambda i: (0, 0))

    tp, sp1, st = pl.pallas_call(
        kernel,
        out_shape=(acc_shape, acc_shape, acc_shape),
        grid_spec=pltpu.PrefetchScalarGridSpec(
            num_scalar_prefetch=0,
            grid=(n_steps,),
            in_specs=[
                pl.BlockSpec((row_tile, lane_w), lambda i: (i, 0)),   # logit diff
                pl.BlockSpec((row_tile, lane_w), lambda i: (i, 0)),   # labels
            ],
            out_specs=(acc_spec, acc_spec, acc_spec),
        ),
        compiler_params=pltpu.CompilerParams(
            dimension_semantics=("arbitrary",),          # batch axis is a reduction
            vmem_limit_bytes=40 * 1024 * 1024,           # ~17 MiB used; safe v5e..v7x
        ),
    )(d, t)

    # Tiny finalize in plain JAX: de-interleave lanes -> per-task sums -> soft F1.
    tp = jnp.sum(tp.reshape(fold, T), axis=0)            # sum_b p1*t
    sp1 = jnp.sum(sp1.reshape(fold, T), axis=0)          # sum_b p1
    st = jnp.sum(st.reshape(fold, T), axis=0)            # sum_b t
    fp = sp1 - tp                                        # sum_b p1*(1-t)  (exact, C == 2)
    fn = st - tp                                         # sum_b p0*t      (exact, C == 2)
    tp = jnp.maximum(tp, SMOOTH)
    fp = jnp.maximum(fp, SMOOTH)
    fn = jnp.maximum(fn, SMOOTH)
    precision = tp / (tp + fp + SMOOTH)
    recall = tp / (tp + fn + SMOOTH)
    f1 = 2.0 * (precision * recall) / (precision + recall + SMOOTH)
    return jnp.sum(1.0 - f1)


def f1_loss_ref(y_pred, y_true, smooth=SMOOTH):
    """Pure-JAX reference mirroring the PyTorch module."""
    p = jax.nn.softmax(y_pred.astype(jnp.float32), axis=-1)
    t = y_true.astype(jnp.float32)
    p0 = p[:, :, 0]
    p1 = p[:, :, 1]
    tp = jnp.maximum(jnp.sum(p1 * t, axis=0), smooth)
    fp = jnp.maximum(jnp.sum(p1 * (1.0 - t), axis=0), smooth)
    fn = jnp.maximum(jnp.sum(p0 * t, axis=0), smooth)
    precision = tp / (tp + fp + smooth)
    recall = tp / (tp + fn + smooth)
    f1 = 2.0 * (precision * recall) / (precision + recall + smooth)
    return jnp.sum(1.0 - f1)


if __name__ == "__main__":
    key = jax.random.PRNGKey(0)

    def run_case(k, B, T, **kw):
        k1, k2 = jax.random.split(k)
        y_pred = jax.random.normal(k1, (B, T, 2), dtype=jnp.float32)
        y_true = jax.random.bernoulli(k2, 0.5, (B, T)).astype(jnp.float32)
        out = jax.block_until_ready(f1_loss(y_pred, y_true, **kw))
        ref = jax.block_until_ready(f1_loss_ref(y_pred, y_true))
        assert jnp.allclose(out, ref, rtol=1e-5, atol=1e-5), (B, T, out, ref)

    k1, k2, k3 = jax.random.split(key, 3)
    # 1) tiny batch: single step, alignment pad + exact tail masking
    run_case(k1, B=8, T=4)
    # 2) odd batch & task count: lane width 384, single step, pad + mask
    run_case(k2, B=300, T=6)
    # 3) multi-step reduction grid with a masked tail tile (small row tile forced)
    run_case(k3, B=1000, T=4, target_tile_elems=1024)

    print("KERNEL_OK")
</pallas_src>

<mosaic_0001>
module attributes {stable_mosaic.version = 11 : i64} {
  func.func @_f1_partials_kernel(%arg0: i32, %arg1: memref<1x128xf32, #tpu.memory_space<vmem>>, %arg2: memref<1x128xf32, #tpu.memory_space<vmem>>, %arg3: memref<1x128xf32, #tpu.memory_space<vmem>>, %arg4: memref<1x128xf32, #tpu.memory_space<vmem>>, %arg5: memref<1x128xf32, #tpu.memory_space<vmem>>) attributes {dimension_semantics = [#tpu.dimension_semantics<arbitrary>], iteration_bounds = array<i64: 1>, scalar_prefetch = 0 : i64, scratch_operands = 0 : i64, tpu.core_type = #tpu.core_type<tc>, window_params = [{transform_indices = @transform_0, window_bounds = array<i64: 1, 128>}, {transform_indices = @transform_1, window_bounds = array<i64: 1, 128>}, {pipeline_mode = #tpu.pipeline_mode<synchronous>, transform_indices = @transform_2, window_bounds = array<i64: 1, 128>}, {pipeline_mode = #tpu.pipeline_mode<synchronous>, transform_indices = @transform_3, window_bounds = array<i64: 1, 128>}, {pipeline_mode = #tpu.pipeline_mode<synchronous>, transform_indices = @transform_4, window_bounds = array<i64: 1, 128>}]} {
    %c0_i32 = arith.constant 0 : i32
    %0 = arith.cmpi eq, %arg0, %c0_i32 : i32
    %1 = arith.extui %0 : i1 to i32
    %c0_i32_0 = arith.constant 0 : i32
    %2 = arith.cmpi ne, %1, %c0_i32_0 : i32
    scf.if %2 {
      %cst_9 = arith.constant 0.000000e+00 : f32
      %20 = vector.broadcast %cst_9 : f32 to vector<1x128xf32>
      %c0_10 = arith.constant 0 : index
      %c0_11 = arith.constant 0 : index
      %21 = vector.load %arg3[%c0_10, %c0_11] : memref<1x128xf32, #tpu.memory_space<vmem>>, vector<1x128xf32>
      tpu.vector_store %arg3[%c0_10, %c0_11], %20 {strides = array<i32>} : memref<1x128xf32, #tpu.memory_space<vmem>>, vector<1x128xf32>,
      %cst_12 = arith.constant 0.000000e+00 : f32
      %22 = vector.broadcast %cst_12 : f32 to vector<1x128xf32>
      %c0_13 = arith.constant 0 : index
      %c0_14 = arith.constant 0 : index
      %23 = vector.load %arg4[%c0_13, %c0_14] : memref<1x128xf32, #tpu.memory_space<vmem>>, vector<1x128xf32>
      tpu.vector_store %arg4[%c0_13, %c0_14], %22 {strides = array<i32>} : memref<1x128xf32, #tpu.memory_space<vmem>>, vector<1x128xf32>,
      %cst_15 = arith.constant 0.000000e+00 : f32
      %24 = vector.broadcast %cst_15 : f32 to vector<1x128xf32>
      %c0_16 = arith.constant 0 : index
      %c0_17 = arith.constant 0 : index
      %25 = vector.load %arg5[%c0_16, %c0_17] : memref<1x128xf32, #tpu.memory_space<vmem>>, vector<1x128xf32>
      tpu.vector_store %arg5[%c0_16, %c0_17], %24 {strides = array<i32>} : memref<1x128xf32, #tpu.memory_space<vmem>>, vector<1x128xf32>,
    } else {
    }
    %c0 = arith.constant 0 : index
    %c0_1 = arith.constant 0 : index
    %3 = vector.load %arg1[%c0, %c0_1] : memref<1x128xf32, #tpu.memory_space<vmem>>, vector<1x128xf32>
    %c0_2 = arith.constant 0 : index
    %c0_3 = arith.constant 0 : index
    %4 = vector.load %arg2[%c0_2, %c0_3] : memref<1x128xf32, #tpu.memory_space<vmem>>, vector<1x128xf32>
    %cst = arith.constant 0.000000e+00 : f32
    %5 = vector.broadcast %cst : f32 to vector<1x128xf32>
    %6 = arith.subf %5, %3 : vector<1x128xf32>
    %7 = math.exp %6 : vector<1x128xf32>
    %cst_4 = arith.constant 1.000000e+00 : f32
    %8 = vector.broadcast %cst_4 : f32 to vector<1x128xf32>
    %9 = arith.addf %8, %7 : vector<1x128xf32>
    %10 = tpu.reciprocal %9 : vector<1x128xf32> -> vector<1x128xf32>
    %c1_i32 = arith.constant 1 : i32
    %11 = arith.muli %arg0, %c1_i32 : i32
    %c1_i32_5 = arith.constant 1 : i32
    %12 = arith.addi %11, %c1_i32_5 : i32
    %c128_i32 = arith.constant 128 : i32
    %13 = arith.muli %12, %c128_i32 : i32
    %c32_i32 = arith.constant 32 : i32
    %14 = arith.cmpi sle, %13, %c32_i32 : i32
    %15 = arith.extui %14 : i1 to i32
    %c0_i32_6 = arith.constant 0 : i32
    %16 = arith.cmpi ne, %15, %c0_i32_6 : i32
    scf.if %16 {
      %c0_9 = arith.constant 0 : index
      %c0_10 = arith.constant 0 : index
      %20 = vector.load %arg3[%c0_9, %c0_10] : memref<1x128xf32, #tpu.memory_space<vmem>>, vector<1x128xf32>
      %21 = arith.mulf %10, %4 : vector<1x128xf32>
      %cst_11 = arith.constant dense<0.000000e+00> : vector<128xf32>
      %22 = vector.multi_reduction <add>, %21, %cst_11 [0] : vector<1x128xf32> to vector<128xf32>
      %23 = vector.shape_cast %22 : vector<128xf32> to vector<1x128xf32>
      %24 = arith.addf %20, %23 : vector<1x128xf32>
      %c0_12 = arith.constant 0 : index
      %c0_13 = arith.constant 0 : index
      %25 = vector.load %arg3[%c0_12, %c0_13] : memref<1x128xf32, #tpu.memory_space<vmem>>, vector<1x128xf32>
      tpu.vector_store %arg3[%c0_12, %c0_13], %24 {strides = array<i32>} : memref<1x128xf32, #tpu.memory_space<vmem>>, vector<1x128xf32>,
      %c0_14 = arith.constant 0 : index
      %c0_15 = arith.constant 0 : index
      %26 = vector.load %arg4[%c0_14, %c0_15] : memref<1x128xf32, #tpu.memory_space<vmem>>, vector<1x128xf32>
      %cst_16 = arith.constant dense<0.000000e+00> : vector<128xf32>
      %27 = vector.multi_reduction <add>, %10, %cst_16 [0] : vector<1x128xf32> to vector<128xf32>
      %28 = vector.shape_cast %27 : vector<128xf32> to vector<1x128xf32>
      %29 = arith.addf %26, %28 : vector<1x128xf32>
      %c0_17 = arith.constant 0 : index
      %c0_18 = arith.constant 0 : index
      %30 = vector.load %arg4[%c0_17, %c0_18] : memref<1x128xf32, #tpu.memory_space<vmem>>, vector<1x128xf32>
      tpu.vector_store %arg4[%c0_17, %c0_18], %29 {strides = array<i32>} : memref<1x128xf32, #tpu.memory_space<vmem>>, vector<1x128xf32>,
      %c0_19 = arith.constant 0 : index
      %c0_20 = arith.constant 0 : index
      %31 = vector.load %arg5[%c0_19, %c0_20] : memref<1x128xf32, #tpu.memory_space<vmem>>, vector<1x128xf32>
      %cst_21 = arith.constant dense<0.000000e+00> : vector<128xf32>
      %32 = vector.multi_reduction <add>, %4, %cst_21 [0] : vector<1x128xf32> to vector<128xf32>
      %33 = vector.shape_cast %32 : vector<128xf32> to vector<1x128xf32>
      %34 = arith.addf %31, %33 : vector<1x128xf32>
      %c0_22 = arith.constant 0 : index
      %c0_23 = arith.constant 0 : index
      %35 = vector.load %arg5[%c0_22, %c0_23] : memref<1x128xf32, #tpu.memory_space<vmem>>, vector<1x128xf32>
      tpu.vector_store %arg5[%c0_22, %c0_23], %34 {strides = array<i32>} : memref<1x128xf32, #tpu.memory_space<vmem>>, vector<1x128xf32>,
    } else {
    }
    %c32_i32_7 = arith.constant 32 : i32
    %17 = arith.cmpi sgt, %13, %c32_i32_7 : i32
    %18 = arith.extui %17 : i1 to i32
    %c0_i32_8 = arith.constant 0 : i32
    %19 = arith.cmpi ne, %18, %c0_i32_8 : i32
    scf.if %19 {
      %20 = tpu.iota {dimensions = array<i32: 0>} : vector<1x128xi32>
      %21 = tpu.iota {dimensions = array<i32: 1>} : vector<1x128xi32>
      %22 = vector.broadcast %11 : i32 to vector<1x128xi32>
      %23 = arith.addi %22, %20 : vector<1x128xi32>
      %c128_i32_9 = arith.constant 128 : i32
      %24 = vector.broadcast %c128_i32_9 : i32 to vector<1x128xi32>
      %25 = arith.muli %23, %24 : vector<1x128xi32>
      %26 = arith.addi %25, %21 : vector<1x128xi32>
      %c32_i32_10 = arith.constant 32 : i32
      %27 = vector.broadcast %c32_i32_10 : i32 to vector<1x128xi32>
      %28 = arith.cmpi slt, %26, %27 : vector<1x128xi32>
      %cst_11 = arith.constant 0.000000e+00 : f32
      %29 = vector.broadcast %cst_11 : f32 to vector<1x128xf32>
      %30 = arith.select %28, %10, %29 : vector<1x128xi1>, vector<1x128xf32>
      %31 = arith.select %28, %4, %29 : vector<1x128xi1>, vector<1x128xf32>
      %c0_12 = arith.constant 0 : index
      %c0_13 = arith.constant 0 : index
      %32 = vector.load %arg3[%c0_12, %c0_13] : memref<1x128xf32, #tpu.memory_space<vmem>>, vector<1x128xf32>
      %33 = arith.mulf %30, %31 : vector<1x128xf32>
      %cst_14 = arith.constant dense<0.000000e+00> : vector<128xf32>
      %34 = vector.multi_reduction <add>, %33, %cst_14 [0] : vector<1x128xf32> to vector<128xf32>
      %35 = vector.shape_cast %34 : vector<128xf32> to vector<1x128xf32>
      %36 = arith.addf %32, %35 : vector<1x128xf32>
      %c0_15 = arith.constant 0 : index
      %c0_16 = arith.constant 0 : index
      %37 = vector.load %arg3[%c0_15, %c0_16] : memref<1x128xf32, #tpu.memory_space<vmem>>, vector<1x128xf32>
      tpu.vector_store %arg3[%c0_15, %c0_16], %36 {strides = array<i32>} : memref<1x128xf32, #tpu.memory_space<vmem>>, vector<1x128xf32>,
      %c0_17 = arith.constant 0 : index
      %c0_18 = arith.constant 0 : index
      %38 = vector.load %arg4[%c0_17, %c0_18] : memref<1x128xf32, #tpu.memory_space<vmem>>, vector<1x128xf32>
      %cst_19 = arith.constant dense<0.000000e+00> : vector<128xf32>
      %39 = vector.multi_reduction <add>, %30, %cst_19 [0] : vector<1x128xf32> to vector<128xf32>
      %40 = vector.shape_cast %39 : vector<128xf32> to vector<1x128xf32>
      %41 = arith.addf %38, %40 : vector<1x128xf32>
      %c0_20 = arith.constant 0 : index
      %c0_21 = arith.constant 0 : index
      %42 = vector.load %arg4[%c0_20, %c0_21] : memref<1x128xf32, #tpu.memory_space<vmem>>, vector<1x128xf32>
      tpu.vector_store %arg4[%c0_20, %c0_21], %41 {strides = array<i32>} : memref<1x128xf32, #tpu.memory_space<vmem>>, vector<1x128xf32>,
      %c0_22 = arith.constant 0 : index
      %c0_23 = arith.constant 0 : index
      %43 = vector.load %arg5[%c0_22, %c0_23] : memref<1x128xf32, #tpu.memory_space<vmem>>, vector<1x128xf32>
      %cst_24 = arith.constant dense<0.000000e+00> : vector<128xf32>
      %44 = vector.multi_reduction <add>, %31, %cst_24 [0] : vector<1x128xf32> to vector<128xf32>
      %45 = vector.shape_cast %44 : vector<128xf32> to vector<1x128xf32>
      %46 = arith.addf %43, %45 : vector<1x128xf32>
      %c0_25 = arith.constant 0 : index
      %c0_26 = arith.constant 0 : index
      %47 = vector.load %arg5[%c0_25, %c0_26] : memref<1x128xf32, #tpu.memory_space<vmem>>, vector<1x128xf32>
      tpu.vector_store %arg5[%c0_25, %c0_26], %46 {strides = array<i32>} : memref<1x128xf32, #tpu.memory_space<vmem>>, vector<1x128xf32>,
    } else {
    }
    return
  }
  func.func @transform_0(%arg0: i32) -> (i32, i32) {
    %c0_i32 = arith.constant 0 : i32
    %c0_i32_0 = arith.constant 0 : i32
    return %arg0, %c0_i32 : i32, i32
  }
  func.func @transform_1(%arg0: i32) -> (i32, i32) {
    %c0_i32 = arith.constant 0 : i32
    %c0_i32_0 = arith.constant 0 : i32
    return %arg0, %c0_i32 : i32, i32
  }
  func.func @transform_2(%arg0: i32) -> (i32, i32) {
    %c0_i32 = arith.constant 0 : i32
    %c0_i32_0 = arith.constant 0 : i32
    %c0_i32_1 = arith.constant 0 : i32
    return %c0_i32, %c0_i32_0 : i32, i32
  }
  func.func @transform_3(%arg0: i32) -> (i32, i32) {
    %c0_i32 = arith.constant 0 : i32
    %c0_i32_0 = arith.constant 0 : i32
    %c0_i32_1 = arith.constant 0 : i32
    return %c0_i32, %c0_i32_0 : i32, i32
  }
  func.func @transform_4(%arg0: i32) -> (i32, i32) {
    %c0_i32 = arith.constant 0 : i32
    %c0_i32_0 = arith.constant 0 : i32
    %c0_i32_1 = arith.constant 0 : i32
    return %c0_i32, %c0_i32_0 : i32, i32
  }
}

</mosaic_0001>

<bundles_post_ra>
// kernel: tpu_custom_call.1
= control target key start
LH: loop header
LB: loop body
LE: loop exit
PB: predicated region body
PF: predicated region fallthrough
CT: control target
= control target key end

     0   :  { %10 = vsyncpa [#allocation3], 0  ;;  %s273_s0 = inlined_call_operand.hbm [shape: f32[1,128], index: 0, kind: input, shape index: {}]   ;;  %s274_s1 = inlined_call_operand.vmem [shape: f32[1,128], index: 1, kind: input, shape index: {}]   ;;  %s275_s2 = inlined_call_operand.hbm [shape: f32[1,128], index: 2, kind: output, shape index: {0}]   ;;  %s276_s3 = inlined_call_operand.hbm [shape: f32[1,128], index: 3, kind: output, shape index: {1}]   ;;  %s277_s4 = inlined_call_operand.hbm [shape: f32[1,128], index: 4, kind: output, shape index: {2}]  }
   0x1   :  { %11 = vsyncpa [#allocation4], 0 }
   0x2   :  { %12 = vsyncpa [#allocation7], 0  ;;  %s226_s15 = smov [#allocation2]  }
   0x3   :  { %s19_s16 = sshll.u32 %s226_s15, 4  ;;  %s20_s16 = int_to_ptr.vmem [resolvable:$true] %s19_s16 }
   0x4   :  { %s148_s17 = scalar_lea.vmem %s20_s16, 16  ;;  %s152_s18 = scalar_lea.vmem %s20_s16, 32 }
   0x5   :  { %p149_p0 = scmp.ne.s32.totalorder %s20_s16, %s148_s17  ;;  %p153_p1 = scmp.lt.s32.totalorder %s20_s16, %s20_s16 }
   0x6   :  { %p154_p2 = scmp.lt.s32.totalorder %s152_s18, %s148_s17 }
   0x8   :  { %p155_p3 = por %p154_p2, %p153_p1 }
   0xa   :  { %p156_p4 = pnand %p155_p3, %p149_p0 }
   0xc   :  { %159 = shalt.err (!%p156_p4)
}
   0xd   :  { %22 = dma.hbm_to_vmem [thread:$0]  %s273_s0, 16, %s20_s16, [#allocation3]  }
   0xe   :  { %220 = dma.done.wait [#allocation3], 16  }
   0xf   :  { %221 = vsyncadd [#allocation3], 4294967280  ;;  %v65_v0 = vlaneseq  ;;  %v227_v1 = vmov 0.0   ;;  %v35_v6 = vld [vmem:[#allocation2] sm:$0x1]  ;;  %s228_s0 = smov [#allocation6]  }
  0x10   :  { %33 = vst [vmem:[#allocation6] sm:$0x1] %v227_v1  ;;  %32 = vst [vmem:[#allocation5] sm:$0x1] %v227_v1  ;;  %v36_v7 = vld [vmem:[%s274_s1] sm:$0x1] }
  0x11   :  { %34 = vst [vmem:[#allocation8] sm:$0x1] %v227_v1  ;;  %v66_v2 = vshrl.u32 %v65_v0, 7  ;;  %v68_v3 = vand.u32 127, %v65_v0  ;;  %v37_v8 = vsub.f32 0.0, %v35_v6  ;;  %s105_s23 = sshll.u32 %s228_s0, 4  ;;  %s106_s23 = int_to_ptr.vmem [resolvable:$true] %s105_s23 }
  0x12   :  { %s229_s24 = smov [#allocation8]   ;;  %s230_s1 = smov [#allocation5]  }
  0x13   :  { %v71_v4 = vmul.u32 128, %v66_v2  ;;  %v38_v11 = vmul.f32 1.442695, %v37_v8  ;;  %s115_s25 = sshll.u32 %s229_s24, 4  ;;  %s95_s26 = sshll.u32 %s230_s1, 4  ;;  %s116_s25 = int_to_ptr.vmem [resolvable:$true] %s115_s25  ;;  %s96_s26 = int_to_ptr.vmem [resolvable:$true] %s95_s26 }
  0x14   :  { %s160_s27 = scalar_lea.vmem %s106_s23, 16  ;;  %s164_s28 = scalar_lea.vmem %s106_s23, 32 }
  0x15   :  { %v72_v5 = vadd.s32 %v71_v4, %v68_v3  ;;  %136 = vpow2.f32 %v38_v11  ;;  %p161_p5 = scmp.ne.s32.totalorder %s106_s23, %s160_s27  ;;  %p165_p6 = scmp.lt.s32.totalorder %s106_s23, %s106_s23 }
  0x16   :  { %p166_p7 = scmp.lt.s32.totalorder %s164_s28, %s160_s27 }
  0x17   :  { %vm73_vm0 = vcmp.lt.s32.totalorder %v72_v5, 32  ;;  %v81_v15 = vld [vmem:[#allocation6] sm:$0x1]  ;;  %v76_v18 = vld [vmem:[#allocation5] sm:$0x1] }
  0x18   :  { %v75_v9 = vsel %vm73_vm0, %v36_v7, 0.0  ;;  %v85_v10 = vld [vmem:[#allocation8] sm:$0x1]  ;;  %p167_p8 = por %p166_p7, %p165_p6 }
  0x19   :  { %v87_v12 = vadd.f32 %v85_v10, %v75_v9 }
  0x1a   :  { %p168_p9 = pnand %p167_p8, %p161_p5 }
  0x1b   :  { %88 = vst [vmem:[#allocation8] sm:$0x1] %v87_v12 }
  0x22   :  { %v137_v13 = vpop.eup %136 }
  0x23   :  { %v40_v14 = vadd.f32 1.0, %v137_v13 }
  0x25   :  { %138 = vrcp.f32 %v40_v14 }
  0x32   :  { %v139_v16 = vpop.eup %138 }
  0x33   :  { %v74_v17 = vsel %vm73_vm0, %v139_v16, 0.0 }
  0x34   :  { %v83_v19 = vadd.f32 %v81_v15, %v74_v17  ;;  %v77_v20 = vmul.f32 %v75_v9, %v74_v17 }
  0x36   :  { %84 = vst [vmem:[#allocation6] sm:$0x1] %v83_v19  ;;  %v79_v21 = vadd.f32 %v77_v20, %v76_v18 }
  0x37   :  { %171 = shalt.err (!%p168_p9)
}
  0x38   :  { %108 = dma.vmem_to_hbm [thread:$0]  %s106_s23, 16, %s276_s3, [#allocation7]   ;;  %80 = vst [vmem:[#allocation5] sm:$0x1] %v79_v21 }
  0x39   :  { %s180_s5 = scalar_lea.vmem %s116_s25, 16  ;;  %s184_s6 = scalar_lea.vmem %s116_s25, 32 }
  0x3a   :  { %p181_p10 = scmp.ne.s32.totalorder %s116_s25, %s180_s5  ;;  %p185_p11 = scmp.lt.s32.totalorder %s116_s25, %s116_s25 }
  0x3b   :  { %p186_p12 = scmp.lt.s32.totalorder %s184_s6, %s180_s5 }
  0x3d   :  { %p187_p13 = por %p186_p12, %p185_p11 }
  0x3f   :  { %p188_p0 = pnand %p187_p13, %p181_p10 }
  0x41   :  { %191 = shalt.err (!%p188_p0)
}
  0x42   :  { %118 = dma.vmem_to_hbm [thread:$0]  %s116_s25, 16, %s277_s4, [#allocation7]  }
  0x43   :  { %s200_s9 = scalar_lea.vmem %s96_s26, 16  ;;  %s204_s10 = scalar_lea.vmem %s96_s26, 32 }
  0x44   :  { %p201_p1 = scmp.ne.s32.totalorder %s96_s26, %s200_s9  ;;  %p205_p2 = scmp.lt.s32.totalorder %s96_s26, %s96_s26 }
  0x45   :  { %p206_p3 = scmp.lt.s32.totalorder %s204_s10, %s200_s9 }
  0x47   :  { %p207_p4 = por %p206_p3, %p205_p2 }
  0x49   :  { %p208_p5 = pnand %p207_p4, %p201_p1 }
  0x4b   :  { %211 = shalt.err (!%p208_p5)
}
  0x4c   :  { %98 = dma.vmem_to_hbm [thread:$0]  %s96_s26, 16, %s275_s2, [#allocation4]  }
  0x4d   :  { %222 = dma.done.wait [#allocation4], 16  }
  0x4e   :  { %223 = vsyncadd [#allocation4], 4294967280 }
  0x4f   :  { %224 = dma.done.wait [#allocation7], 32  }
  0x50   :  { %225 = vsyncadd [#allocation7], 4294967264 }
  0x51   :  { %128 = vsyncpa [#allocation3], 1 }
  0x52   :  { %129 = vsyncpa [#allocation4], 1 }
  0x53   :  { %130 = vsyncpa [#allocation7], 1 }

</bundles_post_ra>
